<compile_context>
chip_gen: v7x
topology: tpu7x:2x2x1
jax: 0.10.0
libtpu: 0.0.40
codegen_flags: <defaults>
</compile_context>

<pallas_src>
import jax
import jax.numpy as jnp
from jax.experimental import pallas as pl
from jax.experimental.pallas import tpu as pltpu

_LANES = 128
_SUBLANES = 8
_MAX_TILE_ROWS = 2048          # 2048 rows * 128 lanes = 256K samples / block
_TARGET_PRED_BYTES = 6 << 20   # aim for ~6 MiB of pred DMA per grid step


def _round_up(x, m):
    return (x + m - 1) // m * m


def _make_focal_loss_kernel(c, gamma, n_total, tile_rows):
    gamma_is_int = float(gamma).is_integer()
    gamma_int = int(gamma)

    def kernel(pred_ref, tgt_ref, alpha_ref, out_ref):
        # pred_ref : (C, tile_rows, 128) native dtype (sample idx = row*128+lane)
        # tgt_ref  : (tile_rows, 128)    int32
        # alpha_ref: (C,)                f32, SMEM scalars
        # out_ref  : (1, 128)            f32 per-lane partial sums for this block
        tgt = tgt_ref[...]
        rows, lanes = tgt.shape

        # Per-class slabs; every op below is a dense (tile_rows, 128) VPU op.
        xs = [pred_ref[k].astype(jnp.float32) for k in range(c)]

        # max over classes (Python-unrolled -> C-1 jnp.maximum)
        m = xs[0]
        for k in range(1, c):
            m = jnp.maximum(m, xs[k])

        # Fused per-class pass: sum of exp, target-logit gather, alpha gather.
        s = jnp.zeros_like(m)
        z_sel = jnp.zeros_like(m)
        alpha_t = jnp.zeros_like(m)
        for k in range(c):
            zk = xs[k] - m
            s = s + jnp.exp(zk)
            hit = tgt == k
            z_sel = jnp.where(hit, zk, z_sel)
            alpha_t = jnp.where(hit, alpha_ref[k], alpha_t)

        logpt = z_sel - jnp.log(s)          # log_softmax gathered at target
        pt = jnp.exp(logpt)
        ce_loss = -logpt
        one_m_pt = jnp.maximum(1.0 - pt, 0.0)   # clamp: avoids NaN for frac gamma
        if gamma_is_int:
            w = one_m_pt ** gamma_int            # integer_pow -> VPU multiplies
        else:
            w = one_m_pt ** jnp.float32(gamma)
        focal = alpha_t * w * ce_loss            # (tile_rows, 128)

        # Mask padded samples so the wrapper's /N uses the true denominator.
        blk = pl.program_id(0)
        row_idx = jax.lax.broadcasted_iota(jnp.int32, (rows, lanes), 0)
        lane_idx = jax.lax.broadcasted_iota(jnp.int32, (rows, lanes), 1)
        gidx = (blk * tile_rows + row_idx) * lanes + lane_idx
        focal = jnp.where(gidx < n_total, focal, 0.0)

        # Only a sublane reduce in-kernel; lanes are summed by the wrapper.
        out_ref[...] = jnp.sum(focal, axis=0, keepdims=True)

    return kernel


def multi_class_focal_loss(pred, target, alpha, gamma=2, reduction="mean",
                           tile_n=None):
    """Pallas TPU equivalent of MultiClassFocalLossWithAlpha.forward.

    pred:   (N, C) float logits (any float dtype; cast to f32 in-kernel)
    target: (N,)   integer class indices
    alpha:  (C,)   per-class weights
    """
    n, c = pred.shape
    itemsize = pred.dtype.itemsize

    rows = _round_up(n, _LANES) // _LANES        # sample rows of 128 lanes

    if tile_n is None:
        tile_rows = _TARGET_PRED_BYTES // (c * itemsize * _LANES)
    else:
        tile_rows = max(tile_n, _LANES) // _LANES
    tile_rows = max(_SUBLANES, min(tile_rows, _MAX_TILE_ROWS))
    tile_rows = _round_up(tile_rows, _SUBLANES)
    # Don't exceed what's needed, and keep >=2 blocks when N is large so the
    # "parallel" grid axis can shard across v7x's two TensorCores.
    tile_rows = min(tile_rows, _round_up(rows, _SUBLANES))
    if rows > _SUBLANES:
        half = _round_up((rows + 1) // 2, _SUBLANES)
        tile_rows = min(tile_rows, max(_SUBLANES, half))

    rows_pad = _round_up(rows, tile_rows)
    num_blocks = rows_pad // tile_rows
    n_pad = rows_pad * _LANES

    # Layout plumbing: samples on lanes, classes Python-unrolled.
    # transpose + pad fuse into a single XLA copy; reshape is contiguous/free.
    pred_t = jnp.pad(jnp.transpose(pred), ((0, 0), (0, n_pad - n)))
    pred_t = pred_t.reshape(c, rows_pad, _LANES)
    tgt = jnp.pad(target.astype(jnp.int32), (0, n_pad - n))
    tgt = tgt.reshape(rows_pad, _LANES)
    alpha_arr = jnp.asarray(alpha, jnp.float32).reshape(c)

    # TODO(synk): very large C would need a C-tiled online logsumexp; here C is
    # assumed small enough to unroll (the module ships C=3).
    partial = pl.pallas_call(
        _make_focal_loss_kernel(c, gamma, n, tile_rows),
        grid=(num_blocks,),
        in_specs=[
            pl.BlockSpec((c, tile_rows, _LANES), lambda i: (0, i, 0)),
            pl.BlockSpec((tile_rows, _LANES), lambda i: (i, 0)),
            pl.BlockSpec(memory_space=pltpu.MemorySpace.SMEM),
        ],
        out_specs=pl.BlockSpec((1, _LANES), lambda i: (0, i)),
        out_shape=jax.ShapeDtypeStruct((1, num_blocks * _LANES), jnp.float32),
        compiler_params=pltpu.CompilerParams(
            dimension_semantics=("parallel",),
            vmem_limit_bytes=48 << 20),
    )(pred_t, tgt, alpha_arr)

    total = jnp.sum(partial)
    if reduction == "mean":
        return total / jnp.float32(n)
    if reduction == "sum":
        return total
    # TODO(synk): reduction='none' (per-sample losses) would need a per-sample
    # output block in the transposed layout plus an un-transpose in the wrapper.
    raise NotImplementedError("reduction='none' not implemented")


def _reference(pred, target, alpha, gamma=2, reduction="mean"):
    """Pure-JAX reference mirroring the PyTorch forward."""
    alpha_t = jnp.asarray(alpha, jnp.float32)[target]
    log_softmax = jax.nn.log_softmax(pred.astype(jnp.float32), axis=1)
    logpt = jnp.take_along_axis(log_softmax, target.reshape(-1, 1), axis=1).reshape(-1)
    ce_loss = -logpt
    pt = jnp.exp(logpt)
    focal = alpha_t * (1.0 - pt) ** gamma * ce_loss
    if reduction == "mean":
        return jnp.mean(focal)
    if reduction == "sum":
        return jnp.sum(focal)
    return focal


if __name__ == "__main__":
    # Deterministic parameters from the module's __init__
    alpha = jnp.array([0.2, 0.3, 0.5], dtype=jnp.float32)
    gamma = 2

    key = jax.random.PRNGKey(0)
    kp, kt = jax.random.split(key)

    # Case 1: module-sized example (N=8 samples, C=3 classes), f32 logits.
    N, C = 8, 3
    pred = jax.random.normal(kp, (N, C), dtype=jnp.float32)
    target = jax.random.randint(kt, (N,), 0, C, dtype=jnp.int32)

    loss = jax.block_until_ready(
        multi_class_focal_loss(pred, target, alpha, gamma=gamma, reduction="mean"))
    ref = _reference(pred, target, alpha, gamma=gamma)
    assert jnp.allclose(loss, ref, atol=1e-5, rtol=1e-5), (loss, ref)

    # Case 2: multi-block grid + ragged tail + bf16 logits (exercises the
    # padded-row masking, in-kernel cast, and >1 parallel blocks).
    N2 = 2500
    kp2, kt2 = jax.random.split(jax.random.PRNGKey(0), 2)
    pred2 = jax.random.normal(kp2, (N2, C), dtype=jnp.float32).astype(jnp.bfloat16)
    target2 = jax.random.randint(kt2, (N2,), 0, C, dtype=jnp.int32)

    loss2 = jax.block_until_ready(
        multi_class_focal_loss(pred2, target2, alpha, gamma=gamma,
                               reduction="mean", tile_n=1024))
    ref2 = _reference(pred2, target2, alpha, gamma=gamma)
    assert jnp.allclose(loss2, ref2, atol=5e-4, rtol=5e-4), (loss2, ref2)

    # Case 3: sum reduction on the auto-tiled path.
    loss3 = jax.block_until_ready(
        multi_class_focal_loss(pred2, target2, alpha, gamma=gamma, reduction="sum"))
    ref3 = _reference(pred2, target2, alpha, gamma=gamma, reduction="sum")
    assert jnp.allclose(loss3, ref3, atol=5e-3, rtol=5e-4), (loss3, ref3)

    print("KERNEL_OK")
</pallas_src>

<mosaic_0001>
module attributes {stable_mosaic.version = 11 : i64} {
  func.func @kernel(%arg0: i32, %arg1: memref<3x8x128xf32, #tpu.memory_space<vmem>>, %arg2: memref<8x128xi32, #tpu.memory_space<vmem>>, %arg3: memref<3xf32, #tpu.memory_space<smem>>, %arg4: memref<1x128xf32, #tpu.memory_space<vmem>>) attributes {dimension_semantics = [#tpu.dimension_semantics<parallel>], iteration_bounds = array<i64: 1>, scalar_prefetch = 0 : i64, scratch_operands = 0 : i64, tpu.core_type = #tpu.core_type<tc>, window_params = [{transform_indices = @transform_0, window_bounds = array<i64: 3, 8, 128>}, {transform_indices = @transform_1, window_bounds = array<i64: 8, 128>}, {transform_indices = @transform_2, window_bounds = array<i64: 3>}, {transform_indices = @transform_3, window_bounds = array<i64: 1, 128>}]} {
    %c0 = arith.constant 0 : index
    %c0_0 = arith.constant 0 : index
    %0 = vector.load %arg2[%c0, %c0_0] : memref<8x128xi32, #tpu.memory_space<vmem>>, vector<8x128xi32>
    %c0_1 = arith.constant 0 : index
    %c0_2 = arith.constant 0 : index
    %c0_3 = arith.constant 0 : index
    %1 = vector.load %arg1[%c0_1, %c0_2, %c0_3] : memref<3x8x128xf32, #tpu.memory_space<vmem>>, vector<1x8x128xf32>
    %2 = vector.shape_cast %1 : vector<1x8x128xf32> to vector<8x128xf32>
    %c1 = arith.constant 1 : index
    %c0_4 = arith.constant 0 : index
    %c0_5 = arith.constant 0 : index
    %3 = vector.load %arg1[%c1, %c0_4, %c0_5] : memref<3x8x128xf32, #tpu.memory_space<vmem>>, vector<1x8x128xf32>
    %4 = vector.shape_cast %3 : vector<1x8x128xf32> to vector<8x128xf32>
    %c2 = arith.constant 2 : index
    %c0_6 = arith.constant 0 : index
    %c0_7 = arith.constant 0 : index
    %5 = vector.load %arg1[%c2, %c0_6, %c0_7] : memref<3x8x128xf32, #tpu.memory_space<vmem>>, vector<1x8x128xf32>
    %6 = vector.shape_cast %5 : vector<1x8x128xf32> to vector<8x128xf32>
    %7 = arith.maximumf %2, %4 : vector<8x128xf32>
    %8 = arith.maximumf %7, %6 : vector<8x128xf32>
    %cst = arith.constant 0.000000e+00 : f32
    %9 = vector.broadcast %cst : f32 to vector<8x128xf32>
    %cst_8 = arith.constant 0.000000e+00 : f32
    %10 = vector.broadcast %cst_8 : f32 to vector<8x128xf32>
    %cst_9 = arith.constant 0.000000e+00 : f32
    %11 = vector.broadcast %cst_9 : f32 to vector<8x128xf32>
    %12 = arith.subf %2, %8 : vector<8x128xf32>
    %13 = math.exp %12 : vector<8x128xf32>
    %14 = arith.addf %9, %13 : vector<8x128xf32>
    %c0_i32 = arith.constant 0 : i32
    %15 = vector.broadcast %c0_i32 : i32 to vector<8x128xi32>
    %16 = arith.cmpi eq, %0, %15 : vector<8x128xi32>
    %17 = arith.select %16, %12, %10 : vector<8x128xi1>, vector<8x128xf32>
    %c0_10 = arith.constant 0 : index
    %18 = memref.load %arg3[%c0_10] : memref<3xf32, #tpu.memory_space<smem>>
    %19 = vector.broadcast %18 : f32 to vector<8x128xf32>
    %20 = arith.select %16, %19, %11 : vector<8x128xi1>, vector<8x128xf32>
    %21 = arith.subf %4, %8 : vector<8x128xf32>
    %22 = math.exp %21 : vector<8x128xf32>
    %23 = arith.addf %14, %22 : vector<8x128xf32>
    %c1_i32 = arith.constant 1 : i32
    %24 = vector.broadcast %c1_i32 : i32 to vector<8x128xi32>
    %25 = arith.cmpi eq, %0, %24 : vector<8x128xi32>
    %26 = arith.select %25, %21, %17 : vector<8x128xi1>, vector<8x128xf32>
    %c1_11 = arith.constant 1 : index
    %27 = memref.load %arg3[%c1_11] : memref<3xf32, #tpu.memory_space<smem>>
    %28 = vector.broadcast %27 : f32 to vector<8x128xf32>
    %29 = arith.select %25, %28, %20 : vector<8x128xi1>, vector<8x128xf32>
    %30 = arith.subf %6, %8 : vector<8x128xf32>
    %31 = math.exp %30 : vector<8x128xf32>
    %32 = arith.addf %23, %31 : vector<8x128xf32>
    %c2_i32 = arith.constant 2 : i32
    %33 = vector.broadcast %c2_i32 : i32 to vector<8x128xi32>
    %34 = arith.cmpi eq, %0, %33 : vector<8x128xi32>
    %35 = arith.select %34, %30, %26 : vector<8x128xi1>, vector<8x128xf32>
    %c2_12 = arith.constant 2 : index
    %36 = memref.load %arg3[%c2_12] : memref<3xf32, #tpu.memory_space<smem>>
    %37 = vector.broadcast %36 : f32 to vector<8x128xf32>
    %38 = arith.select %34, %37, %29 : vector<8x128xi1>, vector<8x128xf32>
    %39 = math.log %32 : vector<8x128xf32>
    %40 = arith.subf %35, %39 : vector<8x128xf32>
    %41 = math.exp %40 : vector<8x128xf32>
    %cst_13 = arith.constant 0.000000e+00 : f32
    %42 = vector.broadcast %cst_13 : f32 to vector<8x128xf32>
    %43 = arith.subf %42, %40 : vector<8x128xf32>
    %cst_14 = arith.constant 1.000000e+00 : f32
    %44 = vector.broadcast %cst_14 : f32 to vector<8x128xf32>
    %45 = arith.subf %44, %41 : vector<8x128xf32>
    %cst_15 = arith.constant 0.000000e+00 : f32
    %46 = vector.broadcast %cst_15 : f32 to vector<8x128xf32>
    %47 = arith.maximumf %45, %46 : vector<8x128xf32>
    %48 = arith.mulf %47, %47 : vector<8x128xf32>
    %49 = arith.mulf %38, %48 : vector<8x128xf32>
    %50 = arith.mulf %49, %43 : vector<8x128xf32>
    %51 = tpu.iota {dimensions = array<i32: 0>} : vector<8x128xi32>
    %52 = tpu.iota {dimensions = array<i32: 1>} : vector<8x128xi32>
    %c8_i32 = arith.constant 8 : i32
    %53 = arith.muli %arg0, %c8_i32 : i32
    %54 = vector.broadcast %53 : i32 to vector<8x128xi32>
    %55 = arith.addi %54, %51 : vector<8x128xi32>
    %c128_i32 = arith.constant 128 : i32
    %56 = vector.broadcast %c128_i32 : i32 to vector<8x128xi32>
    %57 = arith.muli %55, %56 : vector<8x128xi32>
    %58 = arith.addi %57, %52 : vector<8x128xi32>
    %c8_i32_16 = arith.constant 8 : i32
    %59 = vector.broadcast %c8_i32_16 : i32 to vector<8x128xi32>
    %60 = arith.cmpi slt, %58, %59 : vector<8x128xi32>
    %cst_17 = arith.constant 0.000000e+00 : f32
    %61 = vector.broadcast %cst_17 : f32 to vector<8x128xf32>
    %62 = arith.select %60, %50, %61 : vector<8x128xi1>, vector<8x128xf32>
    %cst_18 = arith.constant dense<0.000000e+00> : vector<128xf32>
    %63 = vector.multi_reduction <add>, %62, %cst_18 [0] : vector<8x128xf32> to vector<128xf32>
    %64 = vector.shape_cast %63 : vector<128xf32> to vector<1x128xf32>
    %c0_19 = arith.constant 0 : index
    %c0_20 = arith.constant 0 : index
    %65 = vector.load %arg4[%c0_19, %c0_20] : memref<1x128xf32, #tpu.memory_space<vmem>>, vector<1x128xf32>
    tpu.vector_store %arg4[%c0_19, %c0_20], %64 {strides = array<i32>} : memref<1x128xf32, #tpu.memory_space<vmem>>, vector<1x128xf32>,
    return
  }
  func.func @transform_0(%arg0: i32) -> (i32, i32, i32) {
    %c0_i32 = arith.constant 0 : i32
    %c0_i32_0 = arith.constant 0 : i32
    %c0_i32_1 = arith.constant 0 : i32
    return %c0_i32, %arg0, %c0_i32_0 : i32, i32, i32
  }
  func.func @transform_1(%arg0: i32) -> (i32, i32) {
    %c0_i32 = arith.constant 0 : i32
    %c0_i32_0 = arith.constant 0 : i32
    return %arg0, %c0_i32 : i32, i32
  }
  func.func @transform_2(%arg0: i32) -> i32 {
    %c0_i32 = arith.constant 0 : i32
    %c0_i32_0 = arith.constant 0 : i32
    return %c0_i32 : i32
  }
  func.func @transform_3(%arg0: i32) -> (i32, i32) {
    %c0_i32 = arith.constant 0 : i32
    %c0_i32_0 = arith.constant 0 : i32
    return %c0_i32, %arg0 : i32, i32
  }
}

</mosaic_0001>

<bundles_post_ra>
// kernel: tpu_custom_call.1
= control target key start
LH: loop header
LB: loop body
LE: loop exit
PB: predicated region body
PF: predicated region fallthrough
CT: control target
= control target key end

     0   :  { %8 = vsyncpa [#allocation3], 0  ;;  %s310_s0 = inlined_call_operand.hbm [shape: f32[3,8,128], index: 0, kind: input, shape index: {}]   ;;  %s311_s1 = inlined_call_operand.hbm [shape: s32[8,128], index: 1, kind: input, shape index: {}]   ;;  %s312_s2 = inlined_call_operand.vmem [shape: f32[3], index: 2, kind: input, shape index: {}]   ;;  %s313_s3 = inlined_call_operand.hbm [shape: f32[1,128], index: 3, kind: output, shape index: {}]  }
   0x1   :  { %9 = vsyncpa [#allocation7], 0 }
   0x2   :  { %10 = vsyncpa [#allocation5], 0 }
   0x3   :  { %11 = vsyncpa [#allocation4], 0  ;;  %s239_s12 = smov [#allocation2]   ;;  %s153_s16 = scalar_lea.hbm %s310_s0, 384 }
   0x4   :  { %s17_s13 = sshll.u32 %s239_s12, 4  ;;  %p154_p0 = scmp.ne.s32.totalorder %s310_s0, %s153_s16  ;;  %s18_s13 = int_to_ptr.vmem [resolvable:$true] %s17_s13 }
   0x5   :  { %p157_p1 = scmp.lt.u32.totalorder %s153_s16, %s310_s0 }
   0x7   :  { %p159_p2 = pnand %p157_p1, %p154_p0 }
   0x9   :  { %162 = shalt.err (!%p159_p2)
}
   0xa   :  { %s163_s21 = scalar_lea.vmem %s18_s13, 384  ;;  %p168_p4 = scmp.lt.s32.totalorder %s18_s13, %s18_s13 }
   0xb   :  { %p164_p3 = scmp.ne.s32.totalorder %s18_s13, %s163_s21  ;;  %p169_p5 = scmp.lt.s32.totalorder %s163_s21, %s163_s21 }
   0xd   :  { %p170_p6 = por %p169_p5, %p168_p4 }
   0xf   :  { %p171_p7 = pnand %p170_p6, %p164_p3 }
  0x11   :  { %174 = shalt.err (!%p171_p7)
}
  0x12   :  { %s240_s22 = smov 128   ;;  %s241_s23 = smov 8  }
  0x13   :  { %23 = dma.hbm_to_vmem [thread:$0]  %s310_s0, 384, %s18_s13, [#allocation3], %s240_s22, %s240_s22, %s241_s23  }
  0x14   :  { %s242_s26 = smov [#allocation6]   ;;  %s40_s30 = sshll.u32 %s312_s2, 4  ;;  %s41_s30 = int_to_ptr.vmem [resolvable:$true] %s40_s30 }
  0x15   :  { %s30_s27 = sshll.u32 %s242_s26, 4  ;;  %s175_s6 = scalar_lea.hbm %s311_s1, 128  ;;  %s31_s27 = int_to_ptr.vmem [resolvable:$true] %s30_s27 }
  0x16   :  { %p176_p8 = scmp.ne.s32.totalorder %s311_s1, %s175_s6  ;;  %p179_p9 = scmp.lt.u32.totalorder %s175_s6, %s311_s1 }
  0x18   :  { %p181_p10 = pnand %p179_p9, %p176_p8 }
  0x1a   :  { %184 = shalt.err (!%p181_p10)
}
  0x1b   :  { %s185_s0 = scalar_lea.vmem %s31_s27, 128  ;;  %p190_p12 = scmp.lt.s32.totalorder %s31_s27, %s31_s27 }
  0x1c   :  { %p186_p11 = scmp.ne.s32.totalorder %s31_s27, %s185_s0  ;;  %p191_p13 = scmp.lt.s32.totalorder %s185_s0, %s185_s0 }
  0x1e   :  { %p192_p0 = por %p191_p13, %p190_p12 }
  0x20   :  { %p193_p1 = pnand %p192_p0, %p186_p11 }
  0x22   :  { %196 = shalt.err (!%p193_p1)
}
  0x23   :  { %33 = dma.hbm_to_vmem [thread:$0]  %s311_s1, 128, %s31_s27, [#allocation7]  }
  0x24   :  { %s197_s12 = scalar_lea.vmem %s41_s30, 16  ;;  %p202_p3 = scmp.lt.s32.totalorder %s41_s30, %s41_s30 }
  0x25   :  { %p198_p2 = scmp.ne.s32.totalorder %s41_s30, %s197_s12  ;;  %p203_p4 = scmp.lt.s32.totalorder %s197_s12, %s197_s12 }
  0x27   :  { %p204_p5 = por %p203_p4, %p202_p3 }
  0x29   :  { %p205_p6 = pnand %p204_p5, %p198_p2 }
  0x2b   :  { %208 = shalt.err (!%p205_p6)
}
  0x2c   :  { %s243_s13 = smov [#allocation8]  }
  0x2d   :  { %43 = dma.vmem_to_smem %s41_s30, 16, %s243_s13, [#allocation5]  }
  0x2e   :  { %231 = dma.done.wait [#allocation3], 384  }
  0x2f   :  { %232 = vsyncadd [#allocation3], 4294966912 }
  0x30   :  { %233 = dma.done.wait [#allocation7], 128  }
  0x31   :  { %234 = vsyncadd [#allocation7], 4294967168 }
  0x32   :  { %235 = dma.done.wait [#allocation5], 16  }
  0x33   :  { %236 = vsyncadd [#allocation5], 4294967280 }
  0x34   :  { %53 = sfence }
  0x35   :  { %v55_v0 = vld [vmem:[#allocation2] sm:$0xff]  ;;  %v57_v1 = vld [vmem:[#allocation2 + $0x8] sm:$0xff]  ;;  %v59_v2 = vld [vmem:[#allocation2 + $0x10] sm:$0xff]  ;;  %s68_s1 = sld [smem:[#allocation8]]  ;;  %s135_s14 = sld [smem:[#allocation8 + $0x1]]  ;;  %v100_v24 = vlaneseq }
  0x36   :  { %v60_v3 = vmax.f32 %v55_v0, %v57_v1  ;;  %v54_v15 = vld [vmem:[#allocation6] sm:$0xff]  ;;  %s136_s15 = sld [smem:[#allocation8 + $0x2]]  ;;  %s244_s16 = smov [#allocation9]  }
  0x37   :  { %vm66_vm0 = vcmp.eq.s32.totalorder %v54_v15, 0  ;;  %vm75_vm1 = vcmp.eq.s32.totalorder %v54_v15, 1  ;;  %vm84_vm2 = vcmp.eq.s32.totalorder %v54_v15, 2  ;;  %v101_v26 = vshrl.u32 %v100_v24, 7  ;;  %s124_s17 = sshll.u32 %s244_s16, 4  ;;  %s125_s17 = int_to_ptr.vmem [resolvable:$true] %s124_s17 }
  0x38   :  { %v61_v4 = vmax.f32 %v60_v3, %v59_v2  ;;  %v103_v30 = vand.u32 127, %v100_v24  ;;  %s209_s18 = scalar_lea.vmem %s125_s17, 16  ;;  %s213_s19 = scalar_lea.vmem %s125_s17, 32 }
  0x39   :  { %v107_v31 = vmul.u32 128, %v101_v26  ;;  %p210_p7 = scmp.ne.s32.totalorder %s125_s17, %s209_s18  ;;  %p214_p8 = scmp.lt.s32.totalorder %s125_s17, %s125_s17 }
  0x3a   :  { %v62_v5 = vsub.f32 %v55_v0, %v61_v4  ;;  %v71_v6 = vsub.f32 %v57_v1, %v61_v4  ;;  %v80_v7 = vsub.f32 %v59_v2, %v61_v4  ;;  %p215_p9 = scmp.lt.s32.totalorder %s213_s19, %s209_s18 }
  0x3b   :  { %v69_v25 = vstv %s68_s1  ;;  %v78_v28 = vstv %s135_s14  ;;  %v108_v37 = vadd.s32 %v107_v31, %v103_v30 }
  0x3c   :  { %v63_v8 = vmul.f32 1.442695, %v62_v5  ;;  %v72_v9 = vmul.f32 1.442695, %v71_v6  ;;  %v81_v10 = vmul.f32 1.442695, %v80_v7  ;;  %v87_v33 = vstv %s136_s15  ;;  %p216_p10 = por %p215_p9, %p214_p8 }
  0x3d   :  { %v67_v17 = vsel %vm66_vm0, %v62_v5, 0.0  ;;  %v70_v27 = vsel %vm66_vm0, %v69_v25, 0.0  ;;  %vm109_vm3 = vcmp.lt.s32.totalorder %v108_v37, 8 }
  0x3e   :  { %143 = vpow2.f32 %v63_v8  ;;  %v76_v18 = vsel %vm75_vm1, %v71_v6, %v67_v17  ;;  %v79_v32 = vsel %vm75_vm1, %v78_v28, %v70_v27  ;;  %p217_p11 = pnand %p216_p10, %p210_p7 }
  0x3f   :  { %145 = vpow2.f32 %v72_v9  ;;  %v85_v20 = vsel %vm84_vm2, %v80_v7, %v76_v18  ;;  %v88_v36 = vsel %vm84_vm2, %v87_v33, %v79_v32 }
  0x40   :  { %147 = vpow2.f32 %v81_v10 }
  0x48   :  { %v144_v11 = vpop.eup %143 }
  0x49   :  { %v146_v12 = vpop.eup %145 }
  0x4a   :  { %v148_v13 = vpop.eup %147  ;;  %v74_v14 = vadd.f32 %v146_v12, %v144_v11 }
  0x4c   :  { %v83_v16 = vadd.f32 %v148_v13, %v74_v14 }
  0x4e   :  { %149 = vlog2.f32 %v83_v16 }
  0x58   :  { %v150_v19 = vpop.eup %149 }
  0x59   :  { %v90_v21 = vmul.f32 0.6931472, %v150_v19 }
  0x5b   :  { %v91_v22 = vsub.f32 %v85_v20, %v90_v21 }
  0x5d   :  { %v92_v23 = vmul.f32 1.442695, %v91_v22  ;;  %v94_v38 = vsub.f32 0.0, %v91_v22 }
  0x5f   :  { %151 = vpow2.f32 %v92_v23 }
  0x69   :  { %v152_v29 = vpop.eup %151 }
  0x6a   :  { %v95_v34 = vsub.f32 1.0, %v152_v29 }
  0x6c   :  { %v96_v35 = vmax.f32 %v95_v34, 0.0 }
  0x6e   :  { %v97_v39 = vmul.f32 %v96_v35, %v96_v35 }
  0x70   :  { %v98_v40 = vmul.f32 %v97_v39, %v88_v36 }
  0x72   :  { %v99_v41 = vmul.f32 %v98_v40, %v94_v38 }
  0x74   :  { %v110_v42 = vsel %vm109_vm3, %v99_v41, 0.0 }
  0x75   :  { %v111_v43 = vrot.slane %v110_v42, 4 }
  0x77   :  { %v112_v44 = vadd.f32 %v111_v43, %v110_v42 }
  0x79   :  { %v113_v45 = vrot.slane %v112_v44, 2 }
  0x7b   :  { %v114_v46 = vadd.f32 %v113_v45, %v112_v44 }
  0x7d   :  { %v115_v47 = vrot.slane %v114_v46, 1 }
  0x7f   :  { %v116_v48 = vadd.f32 %v115_v47, %v114_v46 }
  0x81   :  { %117 = vst [vmem:[#allocation9] sm:$0x1] %v116_v48 }
  0x82   :  { %220 = shalt.err (!%p217_p11)
}
  0x83   :  { %s221_s22 = scalar_lea.hbm %s313_s3, 16 }
  0x84   :  { %p222_p12 = scmp.ne.s32.totalorder %s313_s3, %s221_s22  ;;  %p225_p13 = scmp.lt.u32.totalorder %s221_s22, %s313_s3 }
  0x86   :  { %p227_p0 = pnand %p225_p13, %p222_p12 }
  0x88   :  { %230 = shalt.err (!%p227_p0)
}
  0x89   :  { %127 = dma.vmem_to_hbm [thread:$0]  %s125_s17, 16, %s313_s3, [#allocation4]  }
  0x8a   :  { %237 = dma.done.wait [#allocation4], 16  }
  0x8b   :  { %238 = vsyncadd [#allocation4], 4294967280 }
  0x8c   :  { %131 = vsyncpa [#allocation3], 1 }
  0x8d   :  { %132 = vsyncpa [#allocation7], 1 }
  0x8e   :  { %133 = vsyncpa [#allocation4], 1 }
  0x8f   :  { %134 = vsyncpa [#allocation5], 1 }

</bundles_post_ra>
